<compile_context>
chip_gen: v7x
topology: tpu7x:2x2x1
jax: 0.10.0
libtpu: 0.0.40
codegen_flags: <defaults>
</compile_context>

<pallas_src>
import functools

import jax
import jax.numpy as jnp
from jax import lax
from jax.experimental import pallas as pl
from jax.experimental.pallas import tpu as pltpu

NUM_CLASSES = 1        # cfg.MODEL.ROI_HEADS.NUM_CLASSES (single-class dataset)
IOU_THRESHOLD = 0.5    # cfg.MODEL.ROI_HEADS.IOU_THRESHOLDS = [0.5], IOU_LABELS = [0, 1]

# Power-of-two encoding base (>= NUM_CLASSES, >= 2) for the fused (gt index, class)
# argmin: code = idx * _K + class, decoded with shifts/masks (no integer division).
_K = max(2, 1 << (NUM_CLASSES - 1).bit_length())
_K_SHIFT = _K.bit_length() - 1


def _largest_divisor_le(n, cap):
    cap = int(max(1, min(cap, n)))
    for d in range(cap, 0, -1):
        if n % d == 0:
            return d
    return 1


# --------------------------------------------------------------------------------------
# Kernel A: pairwise IoU + Matcher + class assignment, Tb frames per grid step.
#   gt_ref:  (Tb, M, 8)  [:, :, 0:4] gt boxes, [:, :, 4] gt class (as f32), rest pad
#   pr_ref:  (Tb, 4, N)  proposal boxes, coords on sublanes, proposals lane-dense
#   out_ref: (Tb, 3, N)  int32 rows: [matched_idx, matched_label, assigned_class]
# --------------------------------------------------------------------------------------
def _iou_match_kernel(gt_ref, pr_ref, out_ref):
    g = gt_ref[...]                                                   # (Tb, M, 8) f32
    p = pr_ref[...]                                                   # (Tb, 4, N) f32
    gx1, gy1, gx2, gy2 = g[:, :, 0:1], g[:, :, 1:2], g[:, :, 2:3], g[:, :, 3:4]  # (Tb,M,1)
    px1, py1, px2, py2 = p[:, 0:1, :], p[:, 1:2, :], p[:, 2:3, :], p[:, 3:4, :]  # (Tb,1,N)
    gtc = g[:, :, 4:5].astype(jnp.int32)                              # (Tb, M, 1)

    # Clamp degenerate boxes so padded / garbage boxes give IoU 0, not NaN.
    area_g = jnp.maximum(gx2 - gx1, 0.0) * jnp.maximum(gy2 - gy1, 0.0)   # (Tb, M, 1)
    area_p = jnp.maximum(px2 - px1, 0.0) * jnp.maximum(py2 - py1, 0.0)   # (Tb, 1, N)

    iw = jnp.maximum(jnp.minimum(gx2, px2) - jnp.maximum(gx1, px1), 0.0)
    ih = jnp.maximum(jnp.minimum(gy2, py2) - jnp.maximum(gy1, py1), 0.0)
    inter = iw * ih                                                   # (Tb, M, N)
    union = jnp.maximum(area_g + area_p - inter, 1e-6)                # eps-clamped, > 0

    # Matcher fg/bg label, EXACT: iou >= 0.5  <=>  2*inter >= union  (no divide).
    fg_any = jnp.max((2.0 * inter >= union).astype(jnp.int32), axis=1, keepdims=True)
    matched_label = fg_any                                            # (Tb, 1, N) 0/1

    # Argmax ranking only: approx reciprocal goes to the EUP (free slot); the 0.5
    # threshold above is not affected by the ~2^-12 relative error.
    iou = inter * pl.reciprocal(union, approx=True)                   # (Tb, M, N)
    max_iou = jnp.max(iou, axis=1, keepdims=True)                     # (Tb, 1, N)
    iota_m = lax.broadcasted_iota(jnp.int32, iou.shape, 1)            # (Tb, M, N)
    m = iou.shape[1]
    # Fused argmax + class gather: min over (idx * K + class) among max-achieving rows.
    code = jnp.where(iou == max_iou, iota_m * _K + gtc, m * _K)       # ties -> min gt idx
    enc = jnp.min(code, axis=1, keepdims=True)                        # (Tb, 1, N)
    matched_idx = enc >> _K_SHIFT
    cls_at_match = enc & (_K - 1)

    # _sample_proposals class assignment: gt_classes[matched_idx], bg where label==0.
    assigned = jnp.where(matched_label == 1, cls_at_match, NUM_CLASSES)

    # Single consolidated store (3x fewer store-slot ops vs three (1, N) writes).
    out_ref[...] = jnp.concatenate([matched_idx, matched_label, assigned], axis=1)


@functools.partial(jax.jit, static_argnames=("block_t",))
def match_and_label_proposals(gt_boxes, gt_classes, prop_boxes, *, block_t=None):
    """Batched over frames.

    gt_boxes:   (T, M, 4) f32   (pad with zero boxes)
    gt_classes: (T, M)    int32
    prop_boxes: (T, N, 4) f32   (pad with zero boxes -> guaranteed background)
    returns matched_idx, matched_label, assigned_classes, each (T, N) int32.
    """
    T, M, _ = gt_boxes.shape
    N = prop_boxes.shape[1]
    if block_t is None:
        # Amortize the per-grid-step overhead over many frames; per-frame VPU
        # intermediates are tiny (M x N), so 32 frames/step stays well inside vregs+VMEM.
        block_t = _largest_divisor_le(T, 32)
    assert T % block_t == 0

    # Merge gt boxes + classes into one (M, 8) slab -> two kernel inputs instead of three.
    gt_slab = jnp.concatenate(
        [gt_boxes.astype(jnp.float32),
         gt_classes.astype(jnp.float32)[..., None],
         jnp.zeros((T, M, 3), jnp.float32)], axis=-1)                 # (T, M, 8)
    prop_t = jnp.swapaxes(prop_boxes, 1, 2).astype(jnp.float32)       # (T, 4, N) lane-dense

    packed = pl.pallas_call(
        _iou_match_kernel,
        grid=(T // block_t,),
        in_specs=[pl.BlockSpec((block_t, M, 8), lambda t: (t, 0, 0)),
                  pl.BlockSpec((block_t, 4, N), lambda t: (t, 0, 0))],
        out_specs=pl.BlockSpec((block_t, 3, N), lambda t: (t, 0, 0)),
        out_shape=jax.ShapeDtypeStruct((T, 3, N), jnp.int32),
        compiler_params=pltpu.CompilerParams(dimension_semantics=("parallel",)),
    )(gt_slab, prop_t)
    # TODO(synk): for real workloads with N in the 512..2000 range, add an N-tiling grid
    #             axis (block_n ~ 512-1024) so the (M, block_n) intermediates stay in vregs.
    return packed[:, 0, :], packed[:, 1, :], packed[:, 2, :]


# --------------------------------------------------------------------------------------
# Kernel B: reorganize_proposals_by_video (test mode, single video per device)
#   grid = (T // Tb,)  — Tb frames per step, full channel width per step
#   nprop_ref:    (Tb, 1, 1)  int32  valid-proposal count per frame
#   feats_ref:    (Tb, P, C)         box-feature tile (Tb frames)
#   feats_out_ref:(Tb, P, C)         aliased in place with the input
#   valid_ref:    (Tb, 1, P)  int8   per-frame valid-proposal mask
#   causal_ref:   (Tb, 1, TP) int8   frame-level causal row (columns < (t+1)*P)
# --------------------------------------------------------------------------------------
def _reorganize_kernel(nprop_ref, feats_ref, feats_out_ref, valid_ref, causal_ref):
    tb = pl.program_id(0)
    Tb, P, _ = feats_ref.shape
    TP = causal_ref.shape[-1]
    n = nprop_ref[...]                                                # (Tb, 1, 1) int32

    # F.pad semantics: padded rows are exactly zero (where, not *, to kill NaN/inf).
    row_pos = lax.broadcasted_iota(jnp.int32, (Tb, P, 1), 1)          # (Tb, P, 1)
    feats_out_ref[...] = jnp.where(row_pos < n, feats_ref[...], 0.0)

    lane_pos = lax.broadcasted_iota(jnp.int32, (Tb, 1, P), 2)
    valid_ref[...] = (lane_pos < n).astype(jnp.int8)

    frame = tb * Tb + lax.broadcasted_iota(jnp.int32, (Tb, 1, TP), 0)  # global frame index
    col = lax.broadcasted_iota(jnp.int32, (Tb, 1, TP), 2)
    causal_ref[...] = (col < (frame + 1) * P).astype(jnp.int8)


@functools.partial(jax.jit, static_argnames=("block_t", "expand_causal"))
def reorganize_proposals_by_video(num_props, boxes_padded, feats_padded,
                                  *, block_t=None, expand_causal=False):
    """num_props: (T,) int32; boxes_padded: (T, P, 4) f32; feats_padded: (T, P, C) f32.

    Returns (boxes, box_features, valid_boxes, valid_boxes_exceptgt, causal_mask).
    By default the causal mask is frame-compact, (T, T*P) bool — consumers broadcast rows
    per frame and must AND with valid_boxes themselves (same contract as the PyTorch code,
    which also keeps valid_boxes separate).  expand_causal=True materializes the exact
    PyTorch (1, T*P, T*P) mask.  For lane-dense stores, pad P to a multiple of 128.
    """
    T, P, _ = boxes_padded.shape
    C = feats_padded.shape[-1]
    TP = T * P
    itemsize = jnp.dtype(feats_padded.dtype).itemsize

    if block_t is None:
        # Size the per-step feature tile to ~4 MiB so DMA time dominates the fixed
        # per-grid-step overhead (review: MiB-scale tiles reach 85%+ of HBM roofline).
        target_tile_bytes = 4 << 20
        cap = max(1, target_tile_bytes // max(1, P * C * itemsize))
        block_t = _largest_divisor_le(T, cap)
    assert T % block_t == 0

    nprop3 = num_props.reshape(T, 1, 1).astype(jnp.int32)

    # Derive the VMEM budget from the double-buffered tiles (never hard-code 64 MiB:
    # that is the ENTIRE per-TC VMEM on v7x).  Cap at 48 MiB to leave Mosaic headroom.
    tile_bytes = block_t * P * C * itemsize
    vmem_limit = int(min(max(4 * tile_bytes + (4 << 20), 16 << 20), 48 << 20))

    feats_o, valid, causal = pl.pallas_call(
        _reorganize_kernel,
        grid=(T // block_t,),
        in_specs=[pl.BlockSpec((block_t, 1, 1), lambda t: (t, 0, 0)),
                  pl.BlockSpec((block_t, P, C), lambda t: (t, 0, 0))],
        out_specs=(pl.BlockSpec((block_t, P, C), lambda t: (t, 0, 0)),
                   pl.BlockSpec((block_t, 1, P), lambda t: (t, 0, 0)),
                   pl.BlockSpec((block_t, 1, TP), lambda t: (t, 0, 0))),
        out_shape=(jax.ShapeDtypeStruct((T, P, C), feats_padded.dtype),
                   jax.ShapeDtypeStruct((T, 1, P), jnp.int8),
                   jax.ShapeDtypeStruct((T, 1, TP), jnp.int8)),
        # Re-zero the features in place (no second (T, P, C) HBM buffer).
        input_output_aliases={1: 0},
        compiler_params=pltpu.CompilerParams(
            dimension_semantics=("parallel",),
            vmem_limit_bytes=vmem_limit),
    )(nprop3, feats_padded)
    # TODO(synk): on a mem-bound path the re-zero is best fused into the first downstream
    #             consumer of box_features (saves 2*T*P*C*4 bytes of HBM traffic); kept
    #             standalone here to preserve the module boundary.  bf16 output is a
    #             further ~1.4x if the temporal-attention consumer accepts it.

    valid_tp = valid.reshape(T, P).astype(bool)
    # Width-4 boxes are pure lane-waste in-kernel; zero them in the wrapper instead.
    boxes_zeroed = jnp.where(valid_tp[:, :, None], boxes_padded, 0.0)

    boxes = boxes_zeroed.reshape(1, TP, 4)
    box_features = feats_o.reshape(1, TP, C)
    valid_boxes = valid_tp.reshape(1, TP)
    # TODO(synk): training-mode notgt_bool filtering not modeled (eval mode: identical).
    valid_boxes_exceptgt = valid_boxes
    causal_frame = causal.reshape(T, TP).astype(bool)
    if expand_causal:
        causal_mask = jnp.repeat(causal_frame, P, axis=0).reshape(1, TP, TP)
    else:
        causal_mask = causal_frame
    return boxes, box_features, valid_boxes, valid_boxes_exceptgt, causal_mask


# TODO(synk): TemporalROIHeads.forward itself raises NotImplementedError in PyTorch;
#             only the concrete helper data-paths above are implemented.
# TODO(synk): subsample_labels (random fg/bg sampling) is stochastic and omitted;
#             matched_idx of all-zero-IoU proposals falls back to gt 0 but is always
#             labeled background, matching detectron2's argmax-of-zeros behavior.


if __name__ == "__main__":
    key = jax.random.PRNGKey(0)

    # Kernel A demo: T_a frames, M gt boxes/frame (padded), N proposals/frame (lane-dense)
    T_a, M, N = 4, 8, 128
    # Kernel B demo: T frames, P padded proposals/frame (lane-dense 128), C feature chans
    T, P, C = 8, 128, 256

    k1, k2, k3, k4 = jax.random.split(key, 4)

    def make_boxes(k, prefix):
        xy = jax.random.uniform(k, prefix + (2,), minval=0.0, maxval=100.0)
        wh = jax.random.uniform(jax.random.fold_in(k, 1), prefix + (2,),
                                minval=1.0, maxval=50.0)
        return jnp.concatenate([xy, xy + wh], axis=-1).astype(jnp.float32)

    # --- label_and_sample_proposals hot path (batched over frames) ---------------------
    gt_boxes = make_boxes(k1, (T_a, M))                 # (T_a, M, 4)
    gt_classes = jnp.zeros((T_a, M), dtype=jnp.int32)   # single-class dataset
    prop_boxes = make_boxes(k2, (T_a, N))               # (T_a, N, 4)

    matched_idx, matched_label, assigned_classes = match_and_label_proposals(
        gt_boxes, gt_classes, prop_boxes)

    # --- reorganize_proposals_by_video --------------------------------------------------
    boxes_padded = make_boxes(k3, (T, P))               # (T, P, 4)
    feats_padded = jax.random.normal(k4, (T, P, C), dtype=jnp.float32)
    num_props = jnp.array([P, 87, 9, P, 3, 120, 7, 0], dtype=jnp.int32)  # per-frame counts

    boxes, box_features, valid_boxes, valid_boxes_exceptgt, causal_mask = (
        reorganize_proposals_by_video(num_props, boxes_padded, feats_padded))

    jax.block_until_ready((matched_idx, matched_label, assigned_classes,
                           boxes, box_features, valid_boxes, valid_boxes_exceptgt,
                           causal_mask))

    assert matched_idx.shape == (T_a, N) and assigned_classes.shape == (T_a, N)
    assert box_features.shape == (1, T * P, C) and valid_boxes.shape == (1, T * P)
    assert causal_mask.shape == (T, T * P)
    print("KERNEL_OK")
</pallas_src>

<mosaic_0001>
module attributes {stable_mosaic.version = 11 : i64} {
  func.func @_iou_match_kernel(%arg0: i32, %arg1: memref<4x8x8xf32, #tpu.memory_space<vmem>>, %arg2: memref<4x4x128xf32, #tpu.memory_space<vmem>>, %arg3: memref<4x3x128xi32, #tpu.memory_space<vmem>>) attributes {dimension_semantics = [#tpu.dimension_semantics<parallel>], iteration_bounds = array<i64: 1>, scalar_prefetch = 0 : i64, scratch_operands = 0 : i64, tpu.core_type = #tpu.core_type<tc>, window_params = [{transform_indices = @transform_0, window_bounds = array<i64: 4, 8, 8>}, {transform_indices = @transform_1, window_bounds = array<i64: 4, 4, 128>}, {transform_indices = @transform_2, window_bounds = array<i64: 4, 3, 128>}]} {
    %c0 = arith.constant 0 : index
    %c0_0 = arith.constant 0 : index
    %c0_1 = arith.constant 0 : index
    %0 = vector.load %arg1[%c0, %c0_0, %c0_1] : memref<4x8x8xf32, #tpu.memory_space<vmem>>, vector<4x8x8xf32>
    %c0_2 = arith.constant 0 : index
    %c0_3 = arith.constant 0 : index
    %c0_4 = arith.constant 0 : index
    %1 = vector.load %arg2[%c0_2, %c0_3, %c0_4] : memref<4x4x128xf32, #tpu.memory_space<vmem>>, vector<4x4x128xf32>
    %2 = vector.extract_strided_slice %0 {offsets = [0, 0, 0], sizes = [4, 8, 1], strides = [1, 1, 1]} : vector<4x8x8xf32> to vector<4x8x1xf32>
    %3 = vector.extract_strided_slice %0 {offsets = [0, 0, 1], sizes = [4, 8, 1], strides = [1, 1, 1]} : vector<4x8x8xf32> to vector<4x8x1xf32>
    %4 = vector.extract_strided_slice %0 {offsets = [0, 0, 2], sizes = [4, 8, 1], strides = [1, 1, 1]} : vector<4x8x8xf32> to vector<4x8x1xf32>
    %5 = vector.extract_strided_slice %0 {offsets = [0, 0, 3], sizes = [4, 8, 1], strides = [1, 1, 1]} : vector<4x8x8xf32> to vector<4x8x1xf32>
    %6 = vector.extract_strided_slice %1 {offsets = [0, 0, 0], sizes = [4, 1, 128], strides = [1, 1, 1]} : vector<4x4x128xf32> to vector<4x1x128xf32>
    %7 = vector.extract_strided_slice %1 {offsets = [0, 1, 0], sizes = [4, 1, 128], strides = [1, 1, 1]} : vector<4x4x128xf32> to vector<4x1x128xf32>
    %8 = vector.extract_strided_slice %1 {offsets = [0, 2, 0], sizes = [4, 1, 128], strides = [1, 1, 1]} : vector<4x4x128xf32> to vector<4x1x128xf32>
    %9 = vector.extract_strided_slice %1 {offsets = [0, 3, 0], sizes = [4, 1, 128], strides = [1, 1, 1]} : vector<4x4x128xf32> to vector<4x1x128xf32>
    %10 = vector.extract_strided_slice %0 {offsets = [0, 0, 4], sizes = [4, 8, 1], strides = [1, 1, 1]} : vector<4x8x8xf32> to vector<4x8x1xf32>
    %11 = arith.fptosi %10 : vector<4x8x1xf32> to vector<4x8x1xi32>
    %12 = arith.subf %4, %2 : vector<4x8x1xf32>
    %cst = arith.constant 0.000000e+00 : f32
    %13 = vector.broadcast %cst : f32 to vector<4x8x1xf32>
    %14 = arith.maximumf %12, %13 : vector<4x8x1xf32>
    %15 = arith.subf %5, %3 : vector<4x8x1xf32>
    %cst_5 = arith.constant 0.000000e+00 : f32
    %16 = vector.broadcast %cst_5 : f32 to vector<4x8x1xf32>
    %17 = arith.maximumf %15, %16 : vector<4x8x1xf32>
    %18 = arith.mulf %14, %17 : vector<4x8x1xf32>
    %19 = arith.subf %8, %6 : vector<4x1x128xf32>
    %cst_6 = arith.constant 0.000000e+00 : f32
    %20 = vector.broadcast %cst_6 : f32 to vector<4x1x128xf32>
    %21 = arith.maximumf %19, %20 : vector<4x1x128xf32>
    %22 = arith.subf %9, %7 : vector<4x1x128xf32>
    %cst_7 = arith.constant 0.000000e+00 : f32
    %23 = vector.broadcast %cst_7 : f32 to vector<4x1x128xf32>
    %24 = arith.maximumf %22, %23 : vector<4x1x128xf32>
    %25 = arith.mulf %21, %24 : vector<4x1x128xf32>
    %26 = vector.broadcast %4 : vector<4x8x1xf32> to vector<4x8x128xf32>
    %27 = vector.broadcast %8 : vector<4x1x128xf32> to vector<4x8x128xf32>
    %28 = arith.minimumf %26, %27 : vector<4x8x128xf32>
    %29 = vector.broadcast %2 : vector<4x8x1xf32> to vector<4x8x128xf32>
    %30 = vector.broadcast %6 : vector<4x1x128xf32> to vector<4x8x128xf32>
    %31 = arith.maximumf %29, %30 : vector<4x8x128xf32>
    %32 = arith.subf %28, %31 : vector<4x8x128xf32>
    %cst_8 = arith.constant 0.000000e+00 : f32
    %33 = vector.broadcast %cst_8 : f32 to vector<4x8x128xf32>
    %34 = arith.maximumf %32, %33 : vector<4x8x128xf32>
    %35 = vector.broadcast %5 : vector<4x8x1xf32> to vector<4x8x128xf32>
    %36 = vector.broadcast %9 : vector<4x1x128xf32> to vector<4x8x128xf32>
    %37 = arith.minimumf %35, %36 : vector<4x8x128xf32>
    %38 = vector.broadcast %3 : vector<4x8x1xf32> to vector<4x8x128xf32>
    %39 = vector.broadcast %7 : vector<4x1x128xf32> to vector<4x8x128xf32>
    %40 = arith.maximumf %38, %39 : vector<4x8x128xf32>
    %41 = arith.subf %37, %40 : vector<4x8x128xf32>
    %cst_9 = arith.constant 0.000000e+00 : f32
    %42 = vector.broadcast %cst_9 : f32 to vector<4x8x128xf32>
    %43 = arith.maximumf %41, %42 : vector<4x8x128xf32>
    %44 = arith.mulf %34, %43 : vector<4x8x128xf32>
    %45 = vector.broadcast %18 : vector<4x8x1xf32> to vector<4x8x128xf32>
    %46 = vector.broadcast %25 : vector<4x1x128xf32> to vector<4x8x128xf32>
    %47 = arith.addf %45, %46 : vector<4x8x128xf32>
    %48 = arith.subf %47, %44 : vector<4x8x128xf32>
    %cst_10 = arith.constant 9.99999997E-7 : f32
    %49 = vector.broadcast %cst_10 : f32 to vector<4x8x128xf32>
    %50 = arith.maximumf %48, %49 : vector<4x8x128xf32>
    %cst_11 = arith.constant 2.000000e+00 : f32
    %51 = vector.broadcast %cst_11 : f32 to vector<4x8x128xf32>
    %52 = arith.mulf %51, %44 : vector<4x8x128xf32>
    %53 = arith.cmpf oge, %52, %50 : vector<4x8x128xf32>
    %54 = arith.extui %53 : vector<4x8x128xi1> to vector<4x8x128xi32>
    %cst_12 = arith.constant dense<-2147483648> : vector<4x128xi32>
    %55 = vector.multi_reduction <maxsi>, %54, %cst_12 [1] : vector<4x8x128xi32> to vector<4x128xi32>
    %56 = vector.shape_cast %55 : vector<4x128xi32> to vector<4x1x128xi32>
    %57 = tpu.reciprocal %50 {approx = true} : vector<4x8x128xf32> -> vector<4x8x128xf32>
    %58 = arith.mulf %44, %57 : vector<4x8x128xf32>
    %cst_13 = arith.constant dense<0xFF800000> : vector<4x128xf32>
    %59 = vector.multi_reduction <maximumf>, %58, %cst_13 [1] : vector<4x8x128xf32> to vector<4x128xf32>
    %60 = vector.shape_cast %59 : vector<4x128xf32> to vector<4x1x128xf32>
    %61 = tpu.iota {dimensions = array<i32: 1>} : vector<4x8x128xi32>
    %62 = vector.broadcast %60 : vector<4x1x128xf32> to vector<4x8x128xf32>
    %63 = arith.cmpf oeq, %58, %62 : vector<4x8x128xf32>
    %c2_i32 = arith.constant 2 : i32
    %64 = vector.broadcast %c2_i32 : i32 to vector<4x8x128xi32>
    %65 = arith.muli %61, %64 : vector<4x8x128xi32>
    %66 = vector.broadcast %11 : vector<4x8x1xi32> to vector<4x8x128xi32>
    %67 = arith.addi %65, %66 : vector<4x8x128xi32>
    %c16_i32 = arith.constant 16 : i32
    %68 = vector.broadcast %c16_i32 : i32 to vector<4x8x128xi32>
    %69 = arith.select %63, %67, %68 : vector<4x8x128xi1>, vector<4x8x128xi32>
    %cst_14 = arith.constant dense<2147483647> : vector<4x128xi32>
    %70 = vector.multi_reduction <minsi>, %69, %cst_14 [1] : vector<4x8x128xi32> to vector<4x128xi32>
    %71 = vector.shape_cast %70 : vector<4x128xi32> to vector<4x1x128xi32>
    %c1_i32 = arith.constant 1 : i32
    %72 = vector.broadcast %c1_i32 : i32 to vector<4x1x128xi32>
    %73 = arith.shrsi %71, %72 : vector<4x1x128xi32>
    %c1_i32_15 = arith.constant 1 : i32
    %74 = vector.broadcast %c1_i32_15 : i32 to vector<4x1x128xi32>
    %75 = arith.andi %71, %74 : vector<4x1x128xi32>
    %c1_i32_16 = arith.constant 1 : i32
    %76 = vector.broadcast %c1_i32_16 : i32 to vector<4x1x128xi32>
    %77 = arith.cmpi eq, %56, %76 : vector<4x1x128xi32>
    %c1_i32_17 = arith.constant 1 : i32
    %78 = vector.broadcast %c1_i32_17 : i32 to vector<4x1x128xi32>
    %79 = arith.select %77, %75, %78 : vector<4x1x128xi1>, vector<4x1x128xi32>
    %80 = tpu.concatenate %73, %56, %79 in 1 : vector<4x1x128xi32>, vector<4x1x128xi32>, vector<4x1x128xi32> -> vector<4x3x128xi32>
    %c0_18 = arith.constant 0 : index
    %c0_19 = arith.constant 0 : index
    %c0_20 = arith.constant 0 : index
    %81 = vector.load %arg3[%c0_18, %c0_19, %c0_20] : memref<4x3x128xi32, #tpu.memory_space<vmem>>, vector<4x3x128xi32>
    tpu.vector_store %arg3[%c0_18, %c0_19, %c0_20], %80 {strides = array<i32>} : memref<4x3x128xi32, #tpu.memory_space<vmem>>, vector<4x3x128xi32>,
    return
  }
  func.func @transform_0(%arg0: i32) -> (i32, i32, i32) {
    %c0_i32 = arith.constant 0 : i32
    %c0_i32_0 = arith.constant 0 : i32
    %c0_i32_1 = arith.constant 0 : i32
    return %arg0, %c0_i32, %c0_i32_0 : i32, i32, i32
  }
  func.func @transform_1(%arg0: i32) -> (i32, i32, i32) {
    %c0_i32 = arith.constant 0 : i32
    %c0_i32_0 = arith.constant 0 : i32
    %c0_i32_1 = arith.constant 0 : i32
    return %arg0, %c0_i32, %c0_i32_0 : i32, i32, i32
  }
  func.func @transform_2(%arg0: i32) -> (i32, i32, i32) {
    %c0_i32 = arith.constant 0 : i32
    %c0_i32_0 = arith.constant 0 : i32
    %c0_i32_1 = arith.constant 0 : i32
    return %arg0, %c0_i32, %c0_i32_0 : i32, i32, i32
  }
}

</mosaic_0001>

<bundles_post_ra>
// kernel: match_and_label_proposals.1
= control target key start
LH: loop header
LB: loop body
LE: loop exit
PB: predicated region body
PF: predicated region fallthrough
CT: control target
= control target key end

     0   :  { %s526_s13 = smov 2   ;;  %v527_v4 = vmov 2   ;;  %v528_v5 = vmov 0   ;;  %v530_v18 = vmov 3   ;;  %v531_v19 = vmov 1   ;;  %s690_s0 = inlined_call_operand.vmem [shape: f32[4,8,8], index: 0, kind: input, shape index: {}]   ;;  %s691_s1 = inlined_call_operand.vmem [shape: f32[4,4,128], index: 1, kind: input, shape index: {}]   ;;  %s692_s2 = inlined_call_operand.vmem [shape: s32[4,3,128], index: 2, kind: output, shape index: {}]  }
   0x1   :  { %v551_v0 = vld [vmem:[%s690_s0] sm:$0xff]  ;;  %v556_v1 = vld [vmem:[%s690_s0 + $0x10] sm:$0xff]  ;;  %v563_v2 = vld [vmem:[%s690_s0 + $0x8] sm:$0xff]  ;;  %507 = vset.pattern.permute.xlu1 %v527_v4  ;;  %509 = vset.pattern.permute.xlu0 %v528_v5  ;;  %v532_v33 = vmov 4   ;;  %v119_v45 = vlaneseq  ;;  %vm474_vm15 = vcmask 1040384  }
   0x2   :  { %27 = vrot.lane.b32.xlu0 %v551_v0, %s526_s13  ;;  %31 = vrot.lane.b32.xlu1 %v556_v1, %s526_s13  ;;  %v568_v3 = vld [vmem:[%s690_s0 + $0x18] sm:$0xff]  ;;  %s529_s0 = smov 127   ;;  %v492_v26 = vtrunc.f32 %v551_v0  ;;  %v494_v27 = vtrunc.f32 %v563_v2  ;;  %v496_v31 = vtrunc.f32 %v556_v1  ;;  %v15_v46 = vld [vmem:[%s691_s1] sm:$0xf] }
   0x3   :  { %v498_v35 = vtrunc.f32 %v568_v3  ;;  %v71_v47 = vrot.slane %v15_v46, 6  ;;  %v16_v49 = vld [vmem:[%s691_s1 + $0x4] sm:$0xf]  ;;  %v612_v50 = vshrl.u32 %v119_v45, 7  ;;  %v17_v54 = vld [vmem:[%s691_s1 + $0x8] sm:$0xf] }
   0x4   :  { %v493_v30 = vcvt.f32.s32 %v492_v26  ;;  %v495_v32 = vcvt.f32.s32 %v494_v27  ;;  %v497_v34 = vcvt.f32.s32 %v496_v31  ;;  %v72_v53 = vrot.slane %v16_v49, 6  ;;  %v624_v57 = vld [vmem:[%s691_s1 + $0xc] sm:$0xf] }
   0x5   :  { %v499_v36 = vcvt.f32.s32 %v498_v35  ;;  %v79_v52 = vsub.f32 %v15_v46, %v71_v47  ;;  %v618_v55 = vsub.s32 2, %v612_v50  ;;  %v157_v56 = vsub.s32 0, %v612_v50 }
   0x6   :  { %29 = vrot.lane.b32.xlu0 %v563_v2, %s526_s13  ;;  %33 = vrot.lane.b32.xlu1 %v568_v3, %s526_s13  ;;  %v201_v58 = vsub.s32 3, %v612_v50  ;;  %v237_v59 = vsub.s32 1, %v612_v50  ;;  %v80_v62 = vsub.f32 %v16_v49, %v72_v53  ;;  %v73_v63 = vrot.slane %v17_v54, 6 }
   0x7   :  { %v83_v61 = vmax.f32 %v79_v52, 0.0  ;;  %v170_v35 = vrot.slane %v624_v57, %v157_v56 }
  0x74   :  { %v28_v6 = vpop.permute.xlu0 %27  ;;  %v32_v7 = vpop.permute.xlu1 %31 }
  0x75   :  { %v39_v8 = vsub.f32 %v551_v0, %v28_v6  ;;  %v41_v9 = vsub.f32 %v556_v1, %v32_v7  ;;  %v122_v6 = vrot.slane %v15_v46, %v618_v55  ;;  %v91_v7 = vrot.slane %v83_v61, 1 }
  0x77   :  { %v43_v10 = vmax.f32 %v39_v8, 0.0  ;;  %v45_v13 = vmax.f32 %v41_v9, 0.0  ;;  %v84_v8 = vmax.f32 %v80_v62, 0.0  ;;  %v81_v9 = vsub.f32 %v17_v54, %v73_v63 }
  0x78   :  { %v30_v11 = vpop.permute.xlu0 %29  ;;  %v34_v12 = vpop.permute.xlu1 %33 }
  0x79   :  { %v40_v14 = vsub.f32 %v563_v2, %v30_v11  ;;  %51 = vrot.lane.b32.xlu0 %v43_v10, %s529_s0  ;;  %v42_v15 = vsub.f32 %v568_v3, %v34_v12  ;;  %v126_v11 = vrot.slane %v16_v49, %v618_v55  ;;  %v206_v12 = vrot.slane %v16_v49, %v201_v58 }
  0x7b   :  { %v44_v16 = vmax.f32 %v40_v14, 0.0  ;;  %v46_v17 = vmax.f32 %v42_v15, 0.0  ;;  %v242_v14 = vrot.slane %v16_v49, %v237_v59 }
  0x7d   :  { %55 = vrot.lane.b32.xlu0 %v45_v13, %s529_s0  ;;  %53 = vrot.lane.b32.xlu1 %v44_v16, %s529_s0 }
  0x81   :  { %57 = vrot.lane.b32.xlu1 %v46_v17, %s529_s0  ;;  %144 = vperm.xlu0 %509, %v563_v2  }
  0x85   :  { %108 = vperm.xlu1 %507, %v563_v2   ;;  %510 = vset.pattern.permute.xlu0 %v530_v18 }
  0x86   :  { %184 = vperm.xlu0 %510, %v551_v0  }
  0x89   :  { %112 = vperm.xlu1 %507, %v556_v1  }
  0x8a   :  { %196 = vperm.xlu0 %510, %v568_v3  }
  0x8d   :  { %508 = vset.pattern.permute.xlu1 %v528_v5 }
  0x8e   :  { %140 = vperm.xlu1 %508, %v551_v0   ;;  %513 = vset.pattern.permute.xlu0 %v531_v19 }
  0x8f   :  { %224 = vperm.xlu0 %513, %v563_v2  }
  0x92   :  { %148 = vperm.xlu1 %508, %v556_v1  }
  0x93   :  { %514 = vset.pattern.permute.xlu0 %v527_v4 }
  0x94   :  { %104 = vperm.xlu0 %514, %v551_v0  }
  0x96   :  { %152 = vperm.xlu1 %508, %v568_v3  }
  0x98   :  { %116 = vperm.xlu0 %514, %v568_v3  }
  0x9a   :  { %511 = vset.pattern.permute.xlu1 %v530_v18 }
  0x9b   :  { %188 = vperm.xlu1 %511, %v563_v2   ;;  %v202_v2 = vrot.slane %v15_v46, %v201_v58 }
  0x9f   :  { %192 = vperm.xlu1 %511, %v556_v1  }
  0xa3   :  { %512 = vset.pattern.permute.xlu1 %v531_v19 }
  0xa4   :  { %220 = vperm.xlu1 %512, %v551_v0   ;;  %v74_v0 = vrot.slane %v624_v57, 6 }
  0xa8   :  { %228 = vperm.xlu1 %512, %v556_v1   ;;  %v158_v1 = vrot.slane %v15_v46, %v157_v56 }
  0xac   :  { %232 = vperm.xlu1 %512, %v568_v3   ;;  %v238_v3 = vrot.slane %v15_v46, %v237_v59 }
  0xb0   :  { %515 = vset.pattern.permute.xlu1 %v527_v4 }
  0xeb   :  { %v52_v20 = vpop.permute.xlu0 %51 }
  0xec   :  { %v63_v21 = vmul.f32 %v52_v20, %v43_v10  ;;  %v82_v10 = vsub.f32 %v624_v57, %v74_v0  ;;  %v130_v20 = vrot.slane %v17_v54, %v618_v55 }
  0xee   :  { %269 = vperm.xlu0 %514, %v63_v21   ;;  %v166_v21 = vrot.slane %v17_v54, %v157_v56  ;;  %v86_v26 = vmax.f32 %v82_v10, 0.0 }
  0xef   :  { %v54_v22 = vpop.permute.xlu1 %53  ;;  %v56_v24 = vpop.permute.xlu0 %55 }
  0xf0   :  { %v64_v23 = vmul.f32 %v54_v22, %v44_v16  ;;  %v65_v28 = vmul.f32 %v56_v24, %v45_v13  ;;  %v162_v13 = vrot.slane %v16_v49, %v157_v56  ;;  %v92_v24 = vrot.slane %v84_v8, 1 }
  0xf1   :  { %v94_v49 = vrot.slane %v86_v26, 1 }
  0xf2   :  { %274 = vperm.xlu1 %515, %v64_v23   ;;  %v99_v23 = vmul.f32 %v91_v7, %v83_v61 }
  0xf3   :  { %v58_v25 = vpop.permute.xlu1 %57 }
  0xf4   :  { %v66_v29 = vmul.f32 %v58_v25, %v46_v17  ;;  %v85_v25 = vmax.f32 %v81_v9, 0.0 }
  0xf6   :  { %284 = vperm.xlu0 %514, %v66_v29   ;;  %279 = vperm.xlu1 %515, %v65_v28   ;;  %v210_v29 = vrot.slane %v17_v54, %v201_v58  ;;  %v93_v47 = vrot.slane %v85_v25, 1 }
  0xfa   :  { %516 = vset.pattern.permute.xlu1 %v532_v33  ;;  %517 = vset.pattern.permute.xlu0 %v532_v33 }
  0xfb   :  { %403 = vperm.xlu1 %516, %v493_v30   ;;  %406 = vperm.xlu0 %517, %v495_v32   ;;  %v246_v30 = vrot.slane %v17_v54, %v237_v59 }
  0xff   :  { %409 = vperm.xlu1 %516, %v497_v34  }
 0x100   :  { %v145_v41 = vpop.permute.xlu0 %144 }
 0x101   :  { %v172_v28 = vmax.f32 %v145_v41, %v162_v13  ;;  %v100_v41 = vmul.f32 %v92_v24, %v84_v8 }
 0x103   :  { %412 = vperm.xlu1 %516, %v499_v36   ;;  %v214_v36 = vrot.slane %v624_v57, %v201_v58  ;;  %v294_v0 = vrot.slane %v100_v41, %v618_v55 }
 0x104   :  { %v109_v37 = vpop.permute.xlu1 %108 }
 0x105   :  { %v185_v43 = vpop.permute.xlu0 %184  ;;  %v136_v27 = vmin.f32 %v109_v37, %v126_v11  ;;  %v290_v37 = vrot.slane %v99_v23, %v618_v55 }
 0x106   :  { %v215_v17 = vmin.f32 %v185_v43, %v202_v2  ;;  %v134_v43 = vrot.slane %v624_v57, %v618_v55 }
 0x107   :  { %v176_v56 = vsub.f32 %v136_v27, %v172_v28 }
 0x108   :  { %v598_v38 = vpop.permute.xlu1 %112 }
 0x109   :  { %v607_v48 = vpop.permute.xlu0 %196 }
 0x10d   :  { %v141_v39 = vpop.permute.xlu1 %140 }
 0x10e   :  { %v225_v60 = vpop.permute.xlu0 %224  ;;  %v171_v16 = vmax.f32 %v141_v39, %v158_v1  ;;  %v250_v39 = vrot.slane %v624_v57, %v237_v59  ;;  %v218_v57 = vmin.f32 %v607_v48, %v214_v36 }
 0x10f   :  { %v252_v33 = vmax.f32 %v225_v60, %v242_v14 }
 0x111   :  { %v600_v40 = vpop.permute.xlu1 %148 }
 0x112   :  { %v173_v52 = vmax.f32 %v600_v40, %v166_v21  ;;  %v180_v40 = vmax.f32 %v176_v56, 0.0 }
 0x113   :  { %v105_v15 = vpop.permute.xlu0 %104 }
 0x114   :  { %v135_v19 = vmin.f32 %v105_v15, %v122_v6 }
 0x115   :  { %v602_v42 = vpop.permute.xlu1 %152 }
 0x116   :  { %v175_v34 = vsub.f32 %v135_v19, %v171_v16  ;;  %v174_v61 = vmax.f32 %v602_v42, %v170_v35 }
 0x117   :  { %v117_v46 = vpop.permute.xlu0 %116 }
 0x118   :  { %v179_v59 = vmax.f32 %v175_v34, 0.0  ;;  %v138_v63 = vmin.f32 %v117_v46, %v134_v43 }
 0x11a   :  { %v189_v44 = vpop.permute.xlu1 %188  ;;  %v178_v9 = vsub.f32 %v138_v63, %v174_v61 }
 0x11b   :  { %v216_v31 = vmin.f32 %v189_v44, %v206_v12  ;;  %v137_v44 = vmin.f32 %v598_v38, %v130_v20  ;;  %v101_v38 = vmul.f32 %v93_v47, %v85_v25 }
 0x11c   :  { %v182_v19 = vmax.f32 %v178_v9, 0.0 }
 0x11d   :  { %v256_v60 = vsub.f32 %v216_v31, %v252_v33  ;;  %v177_v1 = vsub.f32 %v137_v44, %v173_v52  ;;  %v298_v48 = vrot.slane %v101_v38, %v618_v55 }
 0x11e   :  { %v193_v51 = vpop.permute.xlu1 %192 }
 0x11f   :  { %v217_v53 = vmin.f32 %v193_v51, %v210_v29  ;;  %v260_v51 = vmax.f32 %v256_v60, 0.0  ;;  %v181_v11 = vmax.f32 %v177_v1, 0.0 }
 0x121   :  { %v264_v14 = vmul.f32 %v260_v51, %v180_v40 }
 0x123   :  { %v221_v4 = vpop.permute.xlu1 %220 }
 0x124   :  { %v251_v18 = vmax.f32 %v221_v4, %v238_v3  ;;  %v102_v4 = vmul.f32 %v94_v49, %v86_v26 }
 0x126   :  { %v255_v32 = vsub.f32 %v215_v17, %v251_v18  ;;  %v302_v13 = vrot.slane %v102_v4, %v618_v55  ;;  %v316_v55 = vmul.f32 2.0, %v264_v14 }
 0x127   :  { %v229_v22 = vpop.permute.xlu1 %228 }
 0x128   :  { %v253_v54 = vmax.f32 %v229_v22, %v246_v30  ;;  %v259_v58 = vmax.f32 %v255_v32, 0.0 }
 0x12a   :  { %v257_v2 = vsub.f32 %v217_v53, %v253_v54  ;;  %v263_v6 = vmul.f32 %v259_v58, %v179_v59 }
 0x12b   :  { %v233_v45 = vpop.permute.xlu1 %232 }
 0x12c   :  { %v254_v62 = vmax.f32 %v233_v45, %v250_v39  ;;  %v261_v42 = vmax.f32 %v257_v2, 0.0  ;;  %v315_v15 = vmul.f32 2.0, %v263_v6 }
 0x12e   :  { %v258_v8 = vsub.f32 %v218_v57, %v254_v62  ;;  %v265_v21 = vmul.f32 %v261_v42, %v181_v11  ;;  %v651_v57 = vmul.u32 2, %v612_v50 }
 0x130   :  { %v262_v18 = vmax.f32 %v258_v8, 0.0  ;;  %v317_v36 = vmul.f32 2.0, %v265_v21 }
 0x132   :  { %v266_v29 = vmul.f32 %v262_v18, %v182_v19 }
 0x134   :  { %v318_v43 = vmul.f32 2.0, %v266_v29 }
 0x16d   :  { %v270_v3 = vpop.permute.xlu0 %269 }
 0x16e   :  { %v303_v7 = vadd.f32 %v290_v37, %v270_v3 }
 0x170   :  { %v307_v10 = vsub.f32 %v303_v7, %v263_v6 }
 0x171   :  { %v275_v12 = vpop.permute.xlu1 %274 }
 0x172   :  { %v311_v16 = vmax.f32 %v307_v10, 1e-06  ;;  %v304_v17 = vadd.f32 %v294_v0, %v275_v12 }
 0x174   :  { %vm319_vm0 = vcmp.ge.f32.partialorder %v315_v15, %v311_v16  ;;  %518 = vrcp.f32 %v311_v16  ;;  %v308_v20 = vsub.f32 %v304_v17, %v264_v14 }
 0x175   :  { %v323_v22 = vsel %vm319_vm0, 1, %v528_v5  ;;  %v280_v23 = vpop.permute.xlu1 %279  ;;  %v285_v24 = vpop.permute.xlu0 %284  ;;  %vm479_vm0 = vcmask 1041408  }
 0x176   :  { %v327_v25 = vrot.slane %v323_v22, 4  ;;  %v312_v26 = vmax.f32 %v308_v20, 1e-06  ;;  %v305_v27 = vadd.f32 %v298_v48, %v280_v23  ;;  %v306_v28 = vadd.f32 %v302_v13, %v285_v24 }
 0x178   :  { %520 = vrcp.f32 %v312_v26  ;;  %v309_v30 = vsub.f32 %v305_v27, %v265_v21  ;;  %vm328_vm1 = vcmp.gt.s32.totalorder %v323_v22, %v327_v25  ;;  %vm320_vm2 = vcmp.ge.f32.partialorder %v316_v55, %v312_v26 }
 0x179   :  { %v310_v31 = vsub.f32 %v306_v28, %v266_v29  ;;  %v329_v34 = vsel %vm328_vm1, %v323_v22, %v327_v25  ;;  %v324_v35 = vsel %vm320_vm2, 1, %v528_v5 }
 0x17a   :  { %v313_v32 = vmax.f32 %v309_v30, 1e-06  ;;  %v330_v45 = vrot.slane %v329_v34, 2  ;;  %v336_v46 = vrot.slane %v324_v35, 4  ;;  %v404_v2 = vpop.permute.xlu1 %403  ;;  %v407_v51 = vpop.permute.xlu0 %406 }
 0x17b   :  { %v314_v33 = vmax.f32 %v310_v31, 1e-06  ;;  %v414_v7 = vadd.s32 %v404_v2, %v651_v57  ;;  %v415_v12 = vadd.s32 %v407_v51, %v651_v57 }
 0x17c   :  { %522 = vrcp.f32 %v313_v32  ;;  %vm321_vm3 = vcmp.ge.f32.partialorder %v317_v36, %v313_v32  ;;  %vm331_vm5 = vcmp.gt.s32.totalorder %v329_v34, %v330_v45  ;;  %vm337_vm6 = vcmp.gt.s32.totalorder %v324_v35, %v336_v46 }
 0x17d   :  { %524 = vrcp.f32 %v314_v33  ;;  %v325_v41 = vsel %vm321_vm3, 1, %v528_v5  ;;  %vm322_vm4 = vcmp.ge.f32.partialorder %v318_v43, %v314_v33  ;;  %v332_v60 = vsel %vm331_vm5, %v329_v34, %v330_v45 }
 0x17e   :  { %v519_v39 = vpop.eup %518  ;;  %v345_v52 = vrot.slane %v325_v41, 4  ;;  %v326_v53 = vsel %vm322_vm4, 1, %v528_v5  ;;  %v338_v59 = vsel %vm337_vm6, %v324_v35, %v336_v46  ;;  %v333_v38 = vrot.slane %v332_v60, 1  ;;  %v410_v16 = vpop.permute.xlu1 %409 }
 0x17f   :  { %v367_v37 = vmul.f32 %v519_v39, %v263_v6  ;;  %v354_v62 = vrot.slane %v326_v53, 4  ;;  %v339_v4 = vrot.slane %v338_v59, 2  ;;  %v416_v33 = vadd.s32 %v410_v16, %v651_v57 }
 0x180   :  { %vm346_vm7 = vcmp.gt.s32.totalorder %v325_v41, %v345_v52  ;;  %vm334_vm9 = vcmp.gt.s32.totalorder %v332_v60, %v333_v38 }
 0x181   :  { %v371_v49 = vrot.slane %v367_v37, 4  ;;  %v347_v9 = vsel %vm346_vm7, %v325_v41, %v345_v52  ;;  %vm355_vm8 = vcmp.gt.s32.totalorder %v326_v53, %v354_v62  ;;  %vm340_vm10 = vcmp.gt.s32.totalorder %v338_v59, %v339_v4 }
 0x182   :  { %v521_v47 = vpop.eup %520  ;;  %v356_v15 = vsel %vm355_vm8, %v326_v53, %v354_v62  ;;  %v341_v24 = vsel %vm340_vm10, %v338_v59, %v339_v4  ;;  %v413_v35 = vpop.permute.xlu1 %412 }
 0x183   :  { %v368_v44 = vmul.f32 %v521_v47, %v264_v14  ;;  %v372_v54 = vmax.f32 %v367_v37, %v371_v49  ;;  %v348_v14 = vrot.slane %v347_v9, 2  ;;  %v357_v25 = vrot.slane %v356_v15, 2 }
 0x184   :  { %v342_v31 = vrot.slane %v341_v24, 1  ;;  %v417_v47 = vadd.s32 %v413_v35, %v651_v57 }
 0x185   :  { %v377_v56 = vrot.slane %v368_v44, 4  ;;  %v373_v61 = vrot.slane %v372_v54, 2  ;;  %vm349_vm13 = vcmp.gt.s32.totalorder %v347_v9, %v348_v14  ;;  %vm656_vm1 = vcmp.gt.s32.totalorder %v356_v15, %v357_v25 }
 0x186   :  { %v523_v58 = vpop.eup %522  ;;  %v350_v36 = vsel %vm349_vm13, %v347_v9, %v348_v14  ;;  %vm343_vm6 = vcmp.gt.s32.totalorder %v341_v24, %v342_v31  ;;  %v359_v53 = vsel %vm656_vm1, %v356_v15, %v357_v25 }
 0x187   :  { %v369_v63 = vmul.f32 %v523_v58, %v265_v21  ;;  %v378_v0 = vmax.f32 %v368_v44, %v377_v56  ;;  %v374_v1 = vmax.f32 %v372_v54, %v373_v61  ;;  %v525_v3 = vpop.eup %524  ;;  %v335_v21 = vsel %vm334_vm9, %v332_v60, %v333_v38 }
 0x188   :  { %v370_v8 = vmul.f32 %v525_v3, %v266_v29  ;;  %vm466_vm2 = vcmp.eq.s32.totalorder %v335_v21, 1  ;;  %v344_v59 = vsel %vm343_vm6, %v341_v24, %v342_v31  ;;  %v360_v57 = vrot.slane %v359_v53, 1 }
 0x189   :  { %v383_v40 = vrot.slane %v369_v63, 4  ;;  %v379_v5 = vrot.slane %v378_v0, 2  ;;  %v375_v6 = vrot.slane %v374_v1, 1 }
 0x18a   :  { %v389_v42 = vrot.slane %v370_v8, 4 }
 0x18b   :  { %v384_v50 = vmax.f32 %v369_v63, %v383_v40  ;;  %v380_v10 = vmax.f32 %v378_v0, %v379_v5  ;;  %v376_v11 = vmax.f32 %v374_v1, %v375_v6 }
 0x18c   :  { %v390_v17 = vmax.f32 %v370_v8, %v389_v42 }
 0x18d   :  { %v385_v48 = vrot.slane %v384_v50, 2  ;;  %v381_v13 = vrot.slane %v380_v10, 1  ;;  %vm397_vm11 = vcmp.eq.f32.partialorder %v367_v37, %v376_v11 }
 0x18e   :  { %v418_v18 = vsel %vm397_vm11, %v414_v7, 16  ;;  %v391_v23 = vrot.slane %v390_v17, 2 }
 0x18f   :  { %v386_v19 = vmax.f32 %v384_v50, %v385_v48  ;;  %v382_v20 = vmax.f32 %v380_v10, %v381_v13  ;;  %v422_v22 = vrot.slane %v418_v18, 4 }
 0x190   :  { %v392_v27 = vmax.f32 %v390_v17, %v391_v23 }
 0x191   :  { %v387_v26 = vrot.slane %v386_v19, 1  ;;  %vm398_vm12 = vcmp.eq.f32.partialorder %v368_v44, %v382_v20  ;;  %vm423_vm14 = vcmp.lt.s32.totalorder %v418_v18, %v422_v22  ;;  %v351_v44 = vrot.slane %v350_v36, 1 }
 0x192   :  { %v419_v28 = vsel %vm398_vm12, %v415_v12, 16  ;;  %v424_v29 = vsel %vm423_vm14, %v418_v18, %v422_v22  ;;  %v393_v34 = vrot.slane %v392_v27, 1 }
 0x193   :  { %v388_v55 = vmax.f32 %v386_v19, %v387_v26  ;;  %v431_v30 = vrot.slane %v419_v28, 4  ;;  %v425_v32 = vrot.slane %v424_v29, 2  ;;  %vm663_vm12 = vcmp.gt.s32.totalorder %v350_v36, %v351_v44 }
 0x194   :  { %v394_v45 = vmax.f32 %v392_v27, %v393_v34  ;;  %v353_v50 = vsel %vm663_vm12, %v350_v36, %v351_v44 }
 0x195   :  { %vm399_vm3 = vcmp.eq.f32.partialorder %v369_v63, %v388_v55  ;;  %vm432_vm4 = vcmp.lt.s32.totalorder %v419_v28, %v431_v30  ;;  %vm426_vm5 = vcmp.lt.s32.totalorder %v424_v29, %v425_v32 }
 0x196   :  { %v420_v43 = vsel %vm399_vm3, %v416_v33, 16  ;;  %v433_v46 = vsel %vm432_vm4, %v419_v28, %v431_v30  ;;  %v427_v37 = vsel %vm426_vm5, %v424_v29, %v425_v32  ;;  %vm400_vm7 = vcmp.eq.f32.partialorder %v370_v8, %v394_v45 }
 0x197   :  { %v440_v41 = vrot.slane %v420_v43, 4  ;;  %v434_v49 = vrot.slane %v433_v46, 2  ;;  %v428_v52 = vrot.slane %v427_v37, 1  ;;  %v421_v54 = vsel %vm400_vm7, %v417_v47, 16 }
 0x198   :  { %v449_v58 = vrot.slane %v421_v54, 4  ;;  %vm467_vm3 = vcmp.eq.s32.totalorder %v344_v59, 1  ;;  %vm468_vm5 = vcmp.eq.s32.totalorder %v353_v50, 1 }
 0x199   :  { %vm441_vm8 = vcmp.lt.s32.totalorder %v420_v43, %v440_v41  ;;  %vm435_vm9 = vcmp.lt.s32.totalorder %v433_v46, %v434_v49  ;;  %vm429_vm10 = vcmp.lt.s32.totalorder %v427_v37, %v428_v52 }
 0x19a   :  { %v442_v56 = vsel %vm441_vm8, %v420_v43, %v440_v41  ;;  %v436_v60 = vsel %vm435_vm9, %v433_v46, %v434_v49  ;;  %v430_v61 = vsel %vm429_vm10, %v427_v37, %v428_v52  ;;  %vm450_vm11 = vcmp.lt.s32.totalorder %v421_v54, %v449_v58 }
 0x19b   :  { %v443_v62 = vrot.slane %v442_v56, 2  ;;  %v437_v63 = vrot.slane %v436_v60, 1  ;;  %v458_v0 = vshra.s32 %v430_v61, 1  ;;  %v462_v1 = vand.u32 1, %v430_v61 }
 0x19c   :  { %v451_v3 = vsel %vm450_vm11, %v421_v54, %v449_v58 }
 0x19d   :  { %vm444_vm13 = vcmp.lt.s32.totalorder %v442_v56, %v443_v62  ;;  %vm438_vm14 = vcmp.lt.s32.totalorder %v436_v60, %v437_v63  ;;  %v470_v38 = vsel %vm466_vm2, %v462_v1, 1  ;;  %v475_v4 = vsel %vm474_vm15, %v458_v0, %v335_v21 }
 0x19e   :  { %v445_v40 = vsel %vm444_vm13, %v442_v56, %v443_v62  ;;  %v452_v5 = vrot.slane %v451_v3, 2  ;;  %v480_v51 = vsel %vm479_vm0, %v475_v4, %v470_v38  ;;  %v439_v7 = vsel %vm438_vm14, %v436_v60, %v437_v63 }
 0x19f   :  { %v446_v6 = vrot.slane %v445_v40, 1  ;;  %484 = vst [vmem:[%s692_s2] sm:$0x7] %v480_v51  ;;  %v459_v8 = vshra.s32 %v439_v7, 1  ;;  %v463_v9 = vand.u32 1, %v439_v7  ;;  %vm361_vm2 = vcmp.gt.s32.totalorder %v359_v53, %v360_v57 }
 0x1a0   :  { %vm453_vm1 = vcmp.lt.s32.totalorder %v451_v3, %v452_v5  ;;  %v362_v16 = vsel %vm361_vm2, %v359_v53, %v360_v57 }
 0x1a1   :  { %vm447_vm4 = vcmp.lt.s32.totalorder %v445_v40, %v446_v6  ;;  %v454_v10 = vsel %vm453_vm1, %v451_v3, %v452_v5  ;;  %v471_v12 = vsel %vm467_vm3, %v463_v9, 1  ;;  %v476_v48 = vsel %vm474_vm15, %v459_v8, %v344_v59 }
 0x1a2   :  { %v448_v11 = vsel %vm447_vm4, %v445_v40, %v446_v6  ;;  %v455_v42 = vrot.slane %v454_v10, 1  ;;  %v481_v15 = vsel %vm479_vm0, %v476_v48, %v471_v12  ;;  %vm469_vm7 = vcmp.eq.s32.totalorder %v362_v16, 1 }
 0x1a3   :  { %v460_v13 = vshra.s32 %v448_v11, 1  ;;  %v464_v14 = vand.u32 1, %v448_v11  ;;  %485 = vst [vmem:[%s692_s2 + $0x4] sm:$0x7] %v481_v15 }
 0x1a4   :  { %vm456_vm6 = vcmp.lt.s32.totalorder %v454_v10, %v455_v42 }
 0x1a5   :  { %v472_v17 = vsel %vm468_vm5, %v464_v14, 1  ;;  %v477_v18 = vsel %vm474_vm15, %v460_v13, %v353_v50  ;;  %v457_v19 = vsel %vm456_vm6, %v454_v10, %v455_v42 }
 0x1a6   :  { %v482_v20 = vsel %vm479_vm0, %v477_v18, %v472_v17  ;;  %v461_v21 = vshra.s32 %v457_v19, 1  ;;  %v465_v22 = vand.u32 1, %v457_v19 }
 0x1a7   :  { %486 = vst [vmem:[%s692_s2 + $0x8] sm:$0x7] %v482_v20 }
 0x1a8   :  { %v473_v23 = vsel %vm469_vm7, %v465_v22, 1  ;;  %v478_v24 = vsel %vm474_vm15, %v461_v21, %v362_v16 }
 0x1a9   :  { %v483_v25 = vsel %vm479_vm0, %v478_v24, %v473_v23 }
 0x1aa   :  { %487 = vst [vmem:[%s692_s2 + $0xc] sm:$0x7] %v483_v25 }

</bundles_post_ra>
